<compile_context>
chip_gen: v5e
topology: v5e:2x2
jax: 0.10.0
libtpu: 0.0.40
codegen_flags: <defaults>
</compile_context>

<pallas_src>
import math
from functools import partial

import jax
import jax.numpy as jnp
from jax import lax
from jax.experimental import pallas as pl
from jax.experimental.pallas import tpu as pltpu


def _attention_kernel(x_ref, wqkv_ref, bqkv_ref, wo_ref, bo_ref, o_ref,
                      *, batch, seq, headcount, attn_dim):
    # x_ref: (bb*S, E)   wqkv_ref: (E, 3*H*A)   bqkv_ref: (1, 3*H*A)
    # wo_ref: (H, A, E)  bo_ref: (1, E)          o_ref: (bb*S, E)
    bb, S, H, A = batch, seq, headcount, attn_dim
    HA = H * A
    E = x_ref.shape[-1]
    scale = jnp.float32(1.0 / math.sqrt(A))

    # Causal mask (True strictly above the diagonal), built once per grid step.
    row_ids = lax.broadcasted_iota(jnp.int32, (S, S), 0)
    col_ids = lax.broadcasted_iota(jnp.int32, (S, S), 1)
    causal = col_ids > row_ids

    # ---- Fused QKV projection: one big MXU matmul over all tokens of the block. ----
    qkv = jnp.dot(x_ref[...], wqkv_ref[...],
                  preferred_element_type=jnp.float32) + bqkv_ref[...]        # (bb*S, 3*H*A)

    # ---- Split into per-(batch, head) tiles with static slices (layout-safe). ----
    # TODO(synk): at (8,128)-aligned scaled-up shapes replace with a reshape / pltpu.einshape.
    q_t, k_t, v_t = [], [], []
    for b in range(bb):
        rows_b = qkv[b * S:(b + 1) * S]                                       # (S, 3*H*A)
        for h in range(H):
            q_t.append(rows_b[:, h * A:(h + 1) * A])
            k_t.append(rows_b[:, HA + h * A:HA + (h + 1) * A])
            v_t.append(rows_b[:, 2 * HA + h * A:2 * HA + (h + 1) * A])
    q = jnp.stack(q_t, axis=0) * scale                                        # (G, S, A), G = bb*H
    k = jnp.stack(k_t, axis=0)                                                # (G, S, A)
    v = jnp.stack(v_t, axis=0)                                                # (G, S, A)

    # ---- Attention core, batched over (batch, head) on the leading axis. ----
    scores = jnp.einsum('gqa,gka->gqk', q, k,
                        preferred_element_type=jnp.float32)                   # (G, S, S)
    masked = jnp.where(causal, jnp.float32(-100000.0), scores)                # exact masked_fill
    m = jnp.max(masked, axis=-1, keepdims=True)
    e = jnp.exp(masked - m)
    denom = jnp.sum(e, axis=-1, keepdims=True)
    # Exact reciprocal: approx=True risks exceeding the 1e-5 comparison tolerance.
    pattern = e * pl.reciprocal(denom, approx=False)                          # (G, S, S)
    z = jnp.einsum('gqk,gka->gqa', pattern, v,
                   preferred_element_type=jnp.float32)                        # (G, S, A)

    # ---- Output projection (batched over (batch, head)) + head reduction + bias. ----
    wo_g = jnp.broadcast_to(wo_ref[...][None], (bb, H, A, E)).reshape(bb * H, A, E)
    outh = jnp.einsum('gsa,gae->gse', z, wo_g,
                      preferred_element_type=jnp.float32)                     # (G, S, E)
    out = jnp.sum(outh.reshape(bb, H, S, E), axis=1)                          # (bb, S, E)
    out = out.reshape(bb * S, E) + bo_ref[...]                                # (bb*S, E)

    # Single whole-block store (lane-dense S*E flattening left as a TODO above).
    o_ref[...] = out.astype(o_ref.dtype)


def prepare_attention_params(wq, wk, wv, wo, bq, bk, bv, bo):
    """One-time parameter layout prep (outside the per-call hot path).

    wq/wk/wv (H, E, A) are flattened and concatenated into a single (E, 3*H*A) QKV matrix with
    column order h*A + a inside each of the q/k/v groups (matching the PyTorch reshape); the
    biases are concatenated into (1, 3*H*A).  wo stays (H, A, E); bo becomes (1, E).
    """
    H, E, A = wq.shape

    def flat(w):  # (H, E, A) -> (E, H*A)
        return jnp.transpose(w, (1, 0, 2)).reshape(E, H * A)

    w_qkv = jnp.concatenate([flat(wq), flat(wk), flat(wv)], axis=1)           # (E, 3*H*A)
    b_qkv = jnp.concatenate(
        [bq.reshape(H * A), bk.reshape(H * A), bv.reshape(H * A)]).reshape(1, 3 * H * A)
    return w_qkv, b_qkv, wo, bo.reshape(1, E)


def attention_pallas(residual, params, *, headcount, batch_block=None):
    """residual: (B, S, E); params: output of prepare_attention_params.

    batch_block: batch rows handled per grid step.  Default = whole batch (single grid step,
    amortizes the ~0.35us/step overhead on the single-TC v5e/v6e).  On v7x set batch_block=B//2
    (or 1) so grid=(2,) with dimension_semantics=('parallel',) shards across both TensorCores.
    """
    w_qkv, b_qkv, wo3, bo2 = params
    B, S, E = residual.shape
    H = headcount
    A = wo3.shape[1]

    if batch_block is None:
        batch_block = B
    assert B % batch_block == 0, "batch_block must divide the batch size"
    num_blocks = B // batch_block

    # Token-flattening outside the kernel (plain XLA reshapes, free relative to the kernel).
    x2 = residual.reshape(B * S, E)

    kernel = partial(_attention_kernel, batch=batch_block, seq=S, headcount=H, attn_dim=A)

    def full(shape):
        return pl.BlockSpec(shape, lambda i: (0,) * len(shape))

    out2 = pl.pallas_call(
        kernel,
        out_shape=jax.ShapeDtypeStruct((B * S, E), residual.dtype),
        grid_spec=pltpu.PrefetchScalarGridSpec(
            num_scalar_prefetch=0,
            grid=(num_blocks,),
            in_specs=[
                pl.BlockSpec((batch_block * S, E), lambda i: (i, 0)),   # tokens of this block
                full(w_qkv.shape),                                      # fused QKV weights
                full(b_qkv.shape),                                      # fused QKV biases
                full(wo3.shape),                                        # output weights (H, A, E)
                full(bo2.shape),                                        # output bias (1, E)
            ],
            out_specs=pl.BlockSpec((batch_block * S, E), lambda i: (i, 0)),
        ),
        # At these toy shapes the default scoped VMEM limit is ample; when scaling S/E set
        # pltpu.CompilerParams(vmem_limit_bytes=...) explicitly (esp. on v6e/v7x).
        compiler_params=pltpu.CompilerParams(dimension_semantics=("parallel",)),
    )(x2, w_qkv, b_qkv, wo3, bo2)

    return out2.reshape(B, S, E)


def attention_reference(residual, wq, wk, wv, wo, bq, bk, bv, bo):
    """Plain-JAX transcription of the PyTorch forward (for correctness checking)."""
    B, S, E = residual.shape
    H, _, A = wq.shape
    comps = {}
    for label, w, b in [("query", wq, bq), ("key", wk, bk), ("value", wv, bv)]:
        wf = jnp.transpose(w, (1, 0, 2)).reshape(E, H * A)
        comps[label] = (residual @ wf).reshape(B, S, H, A) + b
    q = jnp.transpose(comps["query"], (0, 2, 1, 3))          # (B, H, S, A)
    k = jnp.transpose(comps["key"], (0, 2, 3, 1))            # (B, H, A, S)
    scores = q @ k / math.sqrt(A)
    mask = jnp.triu(jnp.ones((S, S), dtype=bool), k=1)
    masked = jnp.where(mask, -100000.0, scores)
    pattern = jax.nn.softmax(masked, axis=-1)
    z = jnp.transpose(
        jnp.transpose(comps["value"], (0, 2, 3, 1)) @ jnp.transpose(pattern, (0, 1, 3, 2)),
        (0, 3, 1, 2),
    )                                                        # (B, S, H, A)
    return z.reshape(B, S, H * A) @ wo.reshape(H * A, E) + bo


if __name__ == "__main__":
    # Small config: batch=2, seq=8, embed=32, heads=4, head_dim=8, init std=0.02
    B, S, E, H, A = 2, 8, 32, 4, 8
    init_range = 0.02

    key = jax.random.PRNGKey(0)
    kx, kq, kk, kv, ko = jax.random.split(key, 5)

    residual = jax.random.normal(kx, (B, S, E), dtype=jnp.float32)
    # Weights ~ N(0, init_range), biases zeros (matches the module's __init__).
    wq = init_range * jax.random.normal(kq, (H, E, A), dtype=jnp.float32)
    wk = init_range * jax.random.normal(kk, (H, E, A), dtype=jnp.float32)
    wv = init_range * jax.random.normal(kv, (H, E, A), dtype=jnp.float32)
    wo = init_range * jax.random.normal(ko, (H, A, E), dtype=jnp.float32)
    bq = jnp.zeros((H, A), dtype=jnp.float32)
    bk = jnp.zeros((H, A), dtype=jnp.float32)
    bv = jnp.zeros((H, A), dtype=jnp.float32)
    bo = jnp.zeros((E,), dtype=jnp.float32)

    # One-time parameter layout prep (kept out of the per-call hot path).
    params = prepare_attention_params(wq, wk, wv, wo, bq, bk, bv, bo)

    out = attention_pallas(residual, params, headcount=H)
    out = jax.block_until_ready(out)

    ref = attention_reference(residual, wq, wk, wv, wo, bq, bk, bv, bo)
    assert out.shape == (B, S, E)
    assert jnp.allclose(out, ref, atol=1e-5, rtol=1e-5), "Pallas output mismatch vs reference"

    print("KERNEL_OK")
</pallas_src>

<mosaic_0001>
module attributes {stable_mosaic.version = 11 : i64} {
  func.func @_attention_kernel(%arg0: i32, %arg1: memref<16x32xf32, #tpu.memory_space<vmem>>, %arg2: memref<32x96xf32, #tpu.memory_space<vmem>>, %arg3: memref<1x96xf32, #tpu.memory_space<vmem>>, %arg4: memref<4x8x32xf32, #tpu.memory_space<vmem>>, %arg5: memref<1x32xf32, #tpu.memory_space<vmem>>, %arg6: memref<16x32xf32, #tpu.memory_space<vmem>>) attributes {dimension_semantics = [#tpu.dimension_semantics<parallel>], iteration_bounds = array<i64: 1>, scalar_prefetch = 0 : i64, scratch_operands = 0 : i64, tpu.core_type = #tpu.core_type<tc>, window_params = [{transform_indices = @transform_0, window_bounds = array<i64: 16, 32>}, {pipeline_mode = #tpu.pipeline_mode<synchronous>, transform_indices = @transform_1, window_bounds = array<i64: 32, 96>}, {pipeline_mode = #tpu.pipeline_mode<synchronous>, transform_indices = @transform_2, window_bounds = array<i64: 1, 96>}, {pipeline_mode = #tpu.pipeline_mode<synchronous>, transform_indices = @transform_3, window_bounds = array<i64: 4, 8, 32>}, {pipeline_mode = #tpu.pipeline_mode<synchronous>, transform_indices = @transform_4, window_bounds = array<i64: 1, 32>}, {transform_indices = @transform_5, window_bounds = array<i64: 16, 32>}]} {
    %0 = tpu.iota {dimensions = array<i32: 0>} : vector<8x8xi32>
    %1 = tpu.iota {dimensions = array<i32: 1>} : vector<8x8xi32>
    %2 = arith.cmpi sgt, %1, %0 : vector<8x8xi32>
    %c0 = arith.constant 0 : index
    %c0_0 = arith.constant 0 : index
    %3 = vector.load %arg1[%c0, %c0_0] : memref<16x32xf32, #tpu.memory_space<vmem>>, vector<16x32xf32>
    %c0_1 = arith.constant 0 : index
    %c0_2 = arith.constant 0 : index
    %4 = vector.load %arg2[%c0_1, %c0_2] : memref<32x96xf32, #tpu.memory_space<vmem>>, vector<32x96xf32>
    %cst = arith.constant dense<0.000000e+00> : vector<16x96xf32>
    %5 = tpu.matmul %3, %4, %cst {dimension_numbers = #tpu.dot_dimension_numbers<[1], [0], [0], [1], [0, 0, 1, 1], [], []>} : vector<16x32xf32>, vector<32x96xf32>, vector<16x96xf32> -> vector<16x96xf32>
    %c0_3 = arith.constant 0 : index
    %c0_4 = arith.constant 0 : index
    %6 = vector.load %arg3[%c0_3, %c0_4] : memref<1x96xf32, #tpu.memory_space<vmem>>, vector<1x96xf32>
    %7 = vector.broadcast %6 : vector<1x96xf32> to vector<16x96xf32>
    %8 = arith.addf %5, %7 : vector<16x96xf32>
    %9 = vector.extract_strided_slice %8 {offsets = [0, 0], sizes = [8, 96], strides = [1, 1]} : vector<16x96xf32> to vector<8x96xf32>
    %10 = vector.extract_strided_slice %9 {offsets = [0, 0], sizes = [8, 8], strides = [1, 1]} : vector<8x96xf32> to vector<8x8xf32>
    %11 = vector.extract_strided_slice %9 {offsets = [0, 32], sizes = [8, 8], strides = [1, 1]} : vector<8x96xf32> to vector<8x8xf32>
    %12 = vector.extract_strided_slice %9 {offsets = [0, 64], sizes = [8, 8], strides = [1, 1]} : vector<8x96xf32> to vector<8x8xf32>
    %13 = vector.extract_strided_slice %9 {offsets = [0, 8], sizes = [8, 8], strides = [1, 1]} : vector<8x96xf32> to vector<8x8xf32>
    %14 = vector.extract_strided_slice %9 {offsets = [0, 40], sizes = [8, 8], strides = [1, 1]} : vector<8x96xf32> to vector<8x8xf32>
    %15 = vector.extract_strided_slice %9 {offsets = [0, 72], sizes = [8, 8], strides = [1, 1]} : vector<8x96xf32> to vector<8x8xf32>
    %16 = vector.extract_strided_slice %9 {offsets = [0, 16], sizes = [8, 8], strides = [1, 1]} : vector<8x96xf32> to vector<8x8xf32>
    %17 = vector.extract_strided_slice %9 {offsets = [0, 48], sizes = [8, 8], strides = [1, 1]} : vector<8x96xf32> to vector<8x8xf32>
    %18 = vector.extract_strided_slice %9 {offsets = [0, 80], sizes = [8, 8], strides = [1, 1]} : vector<8x96xf32> to vector<8x8xf32>
    %19 = vector.extract_strided_slice %9 {offsets = [0, 24], sizes = [8, 8], strides = [1, 1]} : vector<8x96xf32> to vector<8x8xf32>
    %20 = vector.extract_strided_slice %9 {offsets = [0, 56], sizes = [8, 8], strides = [1, 1]} : vector<8x96xf32> to vector<8x8xf32>
    %21 = vector.extract_strided_slice %9 {offsets = [0, 88], sizes = [8, 8], strides = [1, 1]} : vector<8x96xf32> to vector<8x8xf32>
    %22 = vector.extract_strided_slice %8 {offsets = [8, 0], sizes = [8, 96], strides = [1, 1]} : vector<16x96xf32> to vector<8x96xf32>
    %23 = vector.extract_strided_slice %22 {offsets = [0, 0], sizes = [8, 8], strides = [1, 1]} : vector<8x96xf32> to vector<8x8xf32>
    %24 = vector.extract_strided_slice %22 {offsets = [0, 32], sizes = [8, 8], strides = [1, 1]} : vector<8x96xf32> to vector<8x8xf32>
    %25 = vector.extract_strided_slice %22 {offsets = [0, 64], sizes = [8, 8], strides = [1, 1]} : vector<8x96xf32> to vector<8x8xf32>
    %26 = vector.extract_strided_slice %22 {offsets = [0, 8], sizes = [8, 8], strides = [1, 1]} : vector<8x96xf32> to vector<8x8xf32>
    %27 = vector.extract_strided_slice %22 {offsets = [0, 40], sizes = [8, 8], strides = [1, 1]} : vector<8x96xf32> to vector<8x8xf32>
    %28 = vector.extract_strided_slice %22 {offsets = [0, 72], sizes = [8, 8], strides = [1, 1]} : vector<8x96xf32> to vector<8x8xf32>
    %29 = vector.extract_strided_slice %22 {offsets = [0, 16], sizes = [8, 8], strides = [1, 1]} : vector<8x96xf32> to vector<8x8xf32>
    %30 = vector.extract_strided_slice %22 {offsets = [0, 48], sizes = [8, 8], strides = [1, 1]} : vector<8x96xf32> to vector<8x8xf32>
    %31 = vector.extract_strided_slice %22 {offsets = [0, 80], sizes = [8, 8], strides = [1, 1]} : vector<8x96xf32> to vector<8x8xf32>
    %32 = vector.extract_strided_slice %22 {offsets = [0, 24], sizes = [8, 8], strides = [1, 1]} : vector<8x96xf32> to vector<8x8xf32>
    %33 = vector.extract_strided_slice %22 {offsets = [0, 56], sizes = [8, 8], strides = [1, 1]} : vector<8x96xf32> to vector<8x8xf32>
    %34 = vector.extract_strided_slice %22 {offsets = [0, 88], sizes = [8, 8], strides = [1, 1]} : vector<8x96xf32> to vector<8x8xf32>
    %35 = vector.shape_cast %10 : vector<8x8xf32> to vector<1x8x8xf32>
    %36 = vector.shape_cast %13 : vector<8x8xf32> to vector<1x8x8xf32>
    %37 = vector.shape_cast %16 : vector<8x8xf32> to vector<1x8x8xf32>
    %38 = vector.shape_cast %19 : vector<8x8xf32> to vector<1x8x8xf32>
    %39 = vector.shape_cast %23 : vector<8x8xf32> to vector<1x8x8xf32>
    %40 = vector.shape_cast %26 : vector<8x8xf32> to vector<1x8x8xf32>
    %41 = vector.shape_cast %29 : vector<8x8xf32> to vector<1x8x8xf32>
    %42 = vector.shape_cast %32 : vector<8x8xf32> to vector<1x8x8xf32>
    %43 = tpu.concatenate %35, %36, %37, %38, %39, %40, %41, %42 in 0 : vector<1x8x8xf32>, vector<1x8x8xf32>, vector<1x8x8xf32>, vector<1x8x8xf32>, vector<1x8x8xf32>, vector<1x8x8xf32>, vector<1x8x8xf32>, vector<1x8x8xf32> -> vector<8x8x8xf32>
    %cst_5 = arith.constant 0.353553385 : f32
    %44 = vector.broadcast %cst_5 : f32 to vector<8x8x8xf32>
    %45 = arith.mulf %43, %44 : vector<8x8x8xf32>
    %46 = vector.shape_cast %11 : vector<8x8xf32> to vector<1x8x8xf32>
    %47 = vector.shape_cast %14 : vector<8x8xf32> to vector<1x8x8xf32>
    %48 = vector.shape_cast %17 : vector<8x8xf32> to vector<1x8x8xf32>
    %49 = vector.shape_cast %20 : vector<8x8xf32> to vector<1x8x8xf32>
    %50 = vector.shape_cast %24 : vector<8x8xf32> to vector<1x8x8xf32>
    %51 = vector.shape_cast %27 : vector<8x8xf32> to vector<1x8x8xf32>
    %52 = vector.shape_cast %30 : vector<8x8xf32> to vector<1x8x8xf32>
    %53 = vector.shape_cast %33 : vector<8x8xf32> to vector<1x8x8xf32>
    %54 = tpu.concatenate %46, %47, %48, %49, %50, %51, %52, %53 in 0 : vector<1x8x8xf32>, vector<1x8x8xf32>, vector<1x8x8xf32>, vector<1x8x8xf32>, vector<1x8x8xf32>, vector<1x8x8xf32>, vector<1x8x8xf32>, vector<1x8x8xf32> -> vector<8x8x8xf32>
    %55 = vector.shape_cast %12 : vector<8x8xf32> to vector<1x8x8xf32>
    %56 = vector.shape_cast %15 : vector<8x8xf32> to vector<1x8x8xf32>
    %57 = vector.shape_cast %18 : vector<8x8xf32> to vector<1x8x8xf32>
    %58 = vector.shape_cast %21 : vector<8x8xf32> to vector<1x8x8xf32>
    %59 = vector.shape_cast %25 : vector<8x8xf32> to vector<1x8x8xf32>
    %60 = vector.shape_cast %28 : vector<8x8xf32> to vector<1x8x8xf32>
    %61 = vector.shape_cast %31 : vector<8x8xf32> to vector<1x8x8xf32>
    %62 = vector.shape_cast %34 : vector<8x8xf32> to vector<1x8x8xf32>
    %63 = tpu.concatenate %55, %56, %57, %58, %59, %60, %61, %62 in 0 : vector<1x8x8xf32>, vector<1x8x8xf32>, vector<1x8x8xf32>, vector<1x8x8xf32>, vector<1x8x8xf32>, vector<1x8x8xf32>, vector<1x8x8xf32>, vector<1x8x8xf32> -> vector<8x8x8xf32>
    "tpu.trace_start"() <{level = 10 : i32, message = "gqa,gka->gqk"}> : () -> ()
    %cst_6 = arith.constant dense<0.000000e+00> : vector<8x8x8xf32>
    %64 = tpu.matmul %45, %54, %cst_6 {dimension_numbers = #tpu.dot_dimension_numbers<[2], [2], [1], [1], [0, 0, 0, 1, 1, 1], [0], [0]>} : vector<8x8x8xf32>, vector<8x8x8xf32>, vector<8x8x8xf32> -> vector<8x8x8xf32>
    %cst_7 = arith.constant -1.000000e+05 : f32
    "tpu.trace_stop"() : () -> ()
    %65 = vector.shape_cast %2 : vector<8x8xi1> to vector<1x8x8xi1>
    %66 = vector.broadcast %65 : vector<1x8x8xi1> to vector<8x8x8xi1>
    %67 = vector.broadcast %cst_7 : f32 to vector<8x8x8xf32>
    %68 = arith.select %66, %67, %64 : vector<8x8x8xi1>, vector<8x8x8xf32>
    %cst_8 = arith.constant dense<0xFF800000> : vector<8x8xf32>
    %69 = vector.multi_reduction <maximumf>, %68, %cst_8 [2] : vector<8x8x8xf32> to vector<8x8xf32>
    %70 = vector.shape_cast %69 : vector<8x8xf32> to vector<8x8x1xf32>
    %71 = vector.broadcast %70 : vector<8x8x1xf32> to vector<8x8x8xf32>
    %72 = arith.subf %68, %71 : vector<8x8x8xf32>
    %73 = math.exp %72 : vector<8x8x8xf32>
    %cst_9 = arith.constant dense<0.000000e+00> : vector<8x8xf32>
    %74 = vector.multi_reduction <add>, %73, %cst_9 [2] : vector<8x8x8xf32> to vector<8x8xf32>
    %75 = vector.shape_cast %74 : vector<8x8xf32> to vector<8x8x1xf32>
    %76 = tpu.reciprocal %75 : vector<8x8x1xf32> -> vector<8x8x1xf32>
    %77 = vector.broadcast %76 : vector<8x8x1xf32> to vector<8x8x8xf32>
    %78 = arith.mulf %73, %77 : vector<8x8x8xf32>
    "tpu.trace_start"() <{level = 10 : i32, message = "gqk,gka->gqa"}> : () -> ()
    %cst_10 = arith.constant dense<0.000000e+00> : vector<8x8x8xf32>
    %79 = tpu.matmul %78, %63, %cst_10 {dimension_numbers = #tpu.dot_dimension_numbers<[2], [1], [1], [2], [0, 0, 0, 1, 1, 2], [0], [0]>} : vector<8x8x8xf32>, vector<8x8x8xf32>, vector<8x8x8xf32> -> vector<8x8x8xf32>
    "tpu.trace_stop"() : () -> ()
    %c0_11 = arith.constant 0 : index
    %c0_12 = arith.constant 0 : index
    %c0_13 = arith.constant 0 : index
    %80 = vector.load %arg4[%c0_11, %c0_12, %c0_13] : memref<4x8x32xf32, #tpu.memory_space<vmem>>, vector<4x8x32xf32>
    %81 = vector.shape_cast %80 : vector<4x8x32xf32> to vector<1x4x8x32xf32>
    %82 = vector.shape_cast %81 : vector<1x4x8x32xf32> to vector<1x4x8x32xf32>
    %83 = vector.broadcast %82 : vector<1x4x8x32xf32> to vector<2x4x8x32xf32>
    %84 = vector.shape_cast %83 : vector<2x4x8x32xf32> to vector<8x8x32xf32>
    "tpu.trace_start"() <{level = 10 : i32, message = "gsa,gae->gse"}> : () -> ()
    %cst_14 = arith.constant dense<0.000000e+00> : vector<8x8x32xf32>
    %85 = tpu.matmul %79, %84, %cst_14 {dimension_numbers = #tpu.dot_dimension_numbers<[2], [1], [1], [2], [0, 0, 0, 1, 1, 2], [0], [0]>} : vector<8x8x8xf32>, vector<8x8x32xf32>, vector<8x8x32xf32> -> vector<8x8x32xf32>
    "tpu.trace_stop"() : () -> ()
    %86 = vector.shape_cast %85 : vector<8x8x32xf32> to vector<2x4x8x32xf32>
    %cst_15 = arith.constant dense<0.000000e+00> : vector<2x8x32xf32>
    %87 = vector.multi_reduction <add>, %86, %cst_15 [1] : vector<2x4x8x32xf32> to vector<2x8x32xf32>
    %88 = vector.shape_cast %87 : vector<2x8x32xf32> to vector<16x32xf32>
    %c0_16 = arith.constant 0 : index
    %c0_17 = arith.constant 0 : index
    %89 = vector.load %arg5[%c0_16, %c0_17] : memref<1x32xf32, #tpu.memory_space<vmem>>, vector<1x32xf32>
    %90 = vector.broadcast %89 : vector<1x32xf32> to vector<16x32xf32>
    %91 = arith.addf %88, %90 : vector<16x32xf32>
    %c0_18 = arith.constant 0 : index
    %c0_19 = arith.constant 0 : index
    %92 = vector.load %arg6[%c0_18, %c0_19] : memref<16x32xf32, #tpu.memory_space<vmem>>, vector<16x32xf32>
    tpu.vector_store %arg6[%c0_18, %c0_19], %91 {strides = array<i32>} : memref<16x32xf32, #tpu.memory_space<vmem>>, vector<16x32xf32>,
    return
  }
  func.func @transform_0(%arg0: i32) -> (i32, i32) {
    %c0_i32 = arith.constant 0 : i32
    %c0_i32_0 = arith.constant 0 : i32
    return %arg0, %c0_i32 : i32, i32
  }
  func.func @transform_1(%arg0: i32) -> (i32, i32) {
    %c0_i32 = arith.constant 0 : i32
    %c0_i32_0 = arith.constant 0 : i32
    %c0_i32_1 = arith.constant 0 : i32
    return %c0_i32, %c0_i32_0 : i32, i32
  }
  func.func @transform_2(%arg0: i32) -> (i32, i32) {
    %c0_i32 = arith.constant 0 : i32
    %c0_i32_0 = arith.constant 0 : i32
    %c0_i32_1 = arith.constant 0 : i32
    return %c0_i32, %c0_i32_0 : i32, i32
  }
  func.func @transform_3(%arg0: i32) -> (i32, i32, i32) {
    %c0_i32 = arith.constant 0 : i32
    %c0_i32_0 = arith.constant 0 : i32
    %c0_i32_1 = arith.constant 0 : i32
    %c0_i32_2 = arith.constant 0 : i32
    return %c0_i32, %c0_i32_0, %c0_i32_1 : i32, i32, i32
  }
  func.func @transform_4(%arg0: i32) -> (i32, i32) {
    %c0_i32 = arith.constant 0 : i32
    %c0_i32_0 = arith.constant 0 : i32
    %c0_i32_1 = arith.constant 0 : i32
    return %c0_i32, %c0_i32_0 : i32, i32
  }
  func.func @transform_5(%arg0: i32) -> (i32, i32) {
    %c0_i32 = arith.constant 0 : i32
    %c0_i32_0 = arith.constant 0 : i32
    return %arg0, %c0_i32 : i32, i32
  }
}

</mosaic_0001>

<bundles_post_ra>
// kernel: tpu_custom_call.1
= control target key start
LH: loop header
LB: loop body
LE: loop exit
PB: predicated region body
PF: predicated region fallthrough
CT: control target
= control target key end

     0   :  { %10 = vsyncpa [#allocation3], 0  ;;  %s1532_s0 = inlined_call_operand.hbm [shape: f32[16,32], index: 0, kind: input, shape index: {}]   ;;  %s1533_s1 = inlined_call_operand.hbm [shape: f32[32,96], index: 1, kind: input, shape index: {}]   ;;  %s1534_s2 = inlined_call_operand.vmem [shape: f32[1,96], index: 2, kind: input, shape index: {}]   ;;  %s1535_s3 = inlined_call_operand.hbm [shape: f32[4,8,32], index: 3, kind: input, shape index: {}]   ;;  %s1536_s4 = inlined_call_operand.vmem [shape: f32[1,32], index: 4, kind: input, shape index: {}]   ;;  %s1537_s5 = inlined_call_operand.hbm [shape: f32[16,32], index: 5, kind: output, shape index: {}]  }
   0x1   :  { %11 = vsyncpa [#allocation6], 0 }
   0x2   :  { %12 = vsyncpa [#allocation4], 0  ;;  %s30_s20 = sshll.u32 %s1533_s1, 4  ;;  %s1199_s21 = smov [#allocation5]   ;;  %s31_s20 = int_to_ptr.hbm [resolvable:$true] %s30_s20 }
   0x3   :  { %s32_s22 = sshll.u32 %s1199_s21, 4  ;;  %s17_s25 = sshll.u32 %s1532_s0, 4  ;;  %s33_s22 = int_to_ptr.vmem [resolvable:$true] %s32_s22  ;;  %s18_s25 = int_to_ptr.hbm [resolvable:$true] %s17_s25 }
   0x4   :  { %s1200_s26 = smov 128   ;;  %s1201_s27 = smov 8  }
   0x5   :  { %38 = dma.hbm_to_vmem [thread:$0]  %s31_s20, 512, %s33_s22, [#allocation6], %s1200_s26, %s1200_s26, %s1201_s27  }
   0x6   :  { %s1202_s28 = smov [#allocation2]   ;;  %s45_s1 = sshll.u32 %s1535_s3, 4  ;;  %s46_s1 = int_to_ptr.hbm [resolvable:$true] %s45_s1 }
   0x7   :  { %s19_s29 = sshll.u32 %s1202_s28, 4  ;;  %s1203_s0 = smov [#allocation7]   ;;  %s20_s29 = int_to_ptr.vmem [resolvable:$true] %s19_s29 }
   0x8   :  { %25 = dma.hbm_to_vmem [thread:$0]  %s18_s25, 256, %s20_s29, [#allocation3], %s1200_s26, %s1200_s26, %s1201_s27  }
   0x9   :  { %s47_s7 = sshll.u32 %s1203_s0, 4  ;;  %s48_s7 = int_to_ptr.vmem [resolvable:$true] %s47_s7 }
   0xa   :  { %53 = dma.hbm_to_vmem [thread:$0]  %s46_s1, 512, %s48_s7, [#allocation6], %s1200_s26, %s1200_s26, %s1201_s27  }
   0xb   :  { %1193 = dma.done.wait [#allocation3], 256  }
   0xc   :  { %1194 = vsyncadd [#allocation3], 4294967040 }
   0xd   :  { %1195 = dma.done.wait [#allocation6], 1024  }
   0xe   :  { %1196 = vsyncadd [#allocation6], 4294966272  ;;  %v78_v0 = vld [vmem:[#allocation5 + $0x18] sm:$0xff]  ;;  %v77_v1 = vld [vmem:[#allocation5 + $0x10] sm:$0xff]  ;;  %vm83_vm0 = vcmask 261120   ;;  %s1204_s9 = smov 112   ;;  %v68_v35 = vlaneseq }
   0xf   :  { %102 = vmatpush.msra.mxu0 %v78_v0  ;;  %v76_v2 = vld [vmem:[#allocation5 + $0x8] sm:$0xff]  ;;  %v75_v3 = vld [vmem:[#allocation5] sm:$0xff]  ;;  %v73_v4 = vld [vmem:[#allocation2] sm:$0xff]  ;;  %s1205_s10 = smov 120   ;;  %s1206_s11 = smov 104   ;;  %vm143_vm1 = vcmask 64512  }
  0x10   :  { %v74_v5 = vld [vmem:[#allocation2 + $0x8] sm:$0xff]  ;;  %v1063_v6 = vld [vmem:[%s1534_s2] ss:$0 sm:$0xff]  ;;  %s1207_s2 = smov 96   ;;  %v69_v36 = vshrl.u32 %v68_v35, 7  ;;  %v71_v37 = vand.u32 127, %v68_v35 }
  0x11   :  { %103 = vmatpush.msra.mxu0 %v77_v1  ;;  %s1208_s12 = smov 64   ;;  %s984_s18 = sshll.u32 %s1537_s5, 4  ;;  %s985_s18 = int_to_ptr.hbm [resolvable:$true] %s984_s18 }
  0x12   :  { %vm1321_vm2 = vcmp.gt.s32.totalorder %v71_v37, %v69_v36 }
  0x13   :  { %104 = vmatpush.msra.mxu0 %v76_v2 }
  0x15   :  { %105 = vmatpush.msra.mxu0 %v75_v3 }
  0x16   :  { %998 = vmatmul.msk.f32.vlgmr.msra.gmra.mxu0 %vm83_vm0, %v73_v4 }
  0x1e   :  { %999 = vmatmul.msk.f32.gmra.mxu0 %vm83_vm0, %v74_v5 }
  0x93   :  { %v107_v7 = vpop.f32.mrf.mxu0 }
  0x94   :  { %v1263_v8 = vadd.f32 %v1063_v6, %v107_v7 }
  0x96   :  { %117 = vrot.lane.b32.xlu1 %v1263_v8, %s1204_s9  ;;  %114 = vrot.lane.b32.xlu0 %v1263_v8, %s1205_s10  ;;  %v133_v20 = vmul.f32 0.35355338, %v1263_v8 }
  0x9b   :  { %v110_v9 = vpop.f32.mrf.mxu0 }
  0x9c   :  { %v1267_v10 = vadd.f32 %v1063_v6, %v110_v9 }
  0x9e   :  { %130 = vrot.lane.b32.xlu1 %v1267_v10, %s1206_s11  ;;  %120 = vrot.lane.b32.xlu0 %v1263_v8, %s1206_s11  ;;  %v137_v30 = vmul.f32 0.35355338, %v1267_v10 }
  0x9f   :  { %124 = vrot.lane.b32.xlu2 %v1267_v10, %s1205_s10 }
  0xa6   :  { %141 = vrot.lane.b32.xlu1 %v1263_v8, %s1207_s2 }
  0xa7   :  { %127 = vrot.lane.b32.xlu2 %v1267_v10, %s1204_s9 }
  0xaf   :  { %250 = vrot.lane.b32.xlu2 %v1267_v10, %s1207_s2 }
  0xf9   :  { %v1275_v11 = vpop.permute.xlu2 %124 }
  0xfa   :  { %v138_v32 = vmul.f32 0.35355338, %v1275_v11 }
 0x101   :  { %v1277_v12 = vpop.permute.xlu2 %127 }
 0x102   :  { %v1058_v13 = vpack.i.bf16 %v1277_v12, %v1275_v11  ;;  %v139_v33 = vmul.f32 0.35355338, %v1277_v12 }
 0x108   :  { %v1281_v14 = vpop.permute.xlu1 %117  ;;  %v1283_v15 = vpop.permute.xlu0 %114 }
 0x109   :  { %196 = vrot.lane.b32.xlu1 %v1281_v14, %s1207_s2  ;;  %169 = vrot.lane.b32.xlu0 %v1283_v15, %s1207_s2  ;;  %v251_v21 = vpop.permute.xlu2 %250  ;;  %v135_v24 = vmul.f32 0.35355338, %v1281_v14  ;;  %v134_v25 = vmul.f32 0.35355338, %v1283_v15 }
 0x110   :  { %v1287_v16 = vpop.permute.xlu1 %130  ;;  %v1289_v17 = vpop.permute.xlu0 %120 }
 0x111   :  { %v1053_v18 = vpack.i.bf16 %v1281_v14, %v1287_v16  ;;  %223 = vrot.lane.b32.xlu0 %v1289_v17, %s1207_s2  ;;  %304 = vrot.lane.b32.xlu1 %v1277_v12, %s1207_s2  ;;  %v136_v29 = vmul.f32 0.35355338, %v1289_v17  ;;  %v140_v34 = vmul.f32 0.35355338, %v1287_v16  ;;  %v1043_v4 = vpack.i.bf16 %v1289_v17, %v1263_v8 }
 0x112   :  { %331 = vrot.lane.b32.xlu2 %v1287_v16, %s1207_s2 }
 0x118   :  { %v142_v19 = vpop.permute.xlu1 %141 }
 0x119   :  { %1000 = vmatpush.xpose.msk.msra.mxu1 %vm143_vm1, %v142_v19  ;;  %277 = vrot.lane.b32.xlu0 %v1275_v11, %s1207_s2 }
 0x11c   :  { %1001 = vmatmul.msk.f32.vlgmr.msra.gmra.mxu1 %vm143_vm1, %v133_v20 }
 0x16c   :  { %v332_v26 = vpop.permute.xlu2 %331 }
 0x17b   :  { %v197_v22 = vpop.permute.xlu1 %196  ;;  %v170_v23 = vpop.permute.xlu0 %169 }
 0x17c   :  { %1002 = vmatpush.xpose.msk.msra.mxu2 %vm143_vm1, %v170_v23  ;;  %1004 = vmatpush.xpose.msk.msra.mxu3 %vm143_vm1, %v197_v22 }
 0x17f   :  { %1003 = vmatmul.msk.f32.vlgmr.msra.gmra.mxu2 %vm143_vm1, %v134_v25  ;;  %1005 = vmatmul.msk.f32.vlgmr.msra.gmra.mxu3 %vm143_vm1, %v135_v24 }
 0x180   :  { %1008 = vmatpush.xpose.msk.msrb.mxu2 %vm143_vm1, %v251_v21 }
 0x183   :  { %v224_v27 = vpop.permute.xlu0 %223  ;;  %v305_v28 = vpop.permute.xlu1 %304 }
 0x184   :  { %1014 = vmatpush.xpose.msk.msra.mxu2 %vm143_vm1, %v332_v26  ;;  %1006 = vmatpush.xpose.msk.msrb.mxu1 %vm143_vm1, %v224_v27 }
 0x187   :  { %1007 = vmatmul.msk.f32.vlgmr.msrb.gmra.mxu1 %vm143_vm1, %v136_v29  ;;  %1009 = vmatmul.msk.f32.vlgmr.msrb.gmra.mxu2 %vm143_vm1, %v137_v30 }
 0x188   :  { %1012 = vmatpush.xpose.msk.msra.mxu1 %vm143_vm1, %v305_v28 }
 0x18b   :  { %v278_v31 = vpop.permute.xlu0 %277 }
 0x18c   :  { %1010 = vmatpush.xpose.msk.msrb.mxu3 %vm143_vm1, %v278_v31 }
 0x18f   :  { %1011 = vmatmul.msk.f32.vlgmr.msrb.gmra.mxu3 %vm143_vm1, %v138_v32  ;;  %1013 = vmatmul.msk.f32.vlgmr.msra.gmra.mxu1 %vm143_vm1, %v139_v33 }
 0x190   :  { %1015 = vmatmul.msk.f32.vlgmr.msra.gmra.mxu2 %vm143_vm1, %v140_v34 }
 0x199   :  { %v166_v39 = vpop.f32.mrf.mxu1 }
 0x19a   :  { %v360_v40 = vsel %vm1321_vm2, -100000.0, %v166_v39 }
 0x19b   :  { %v368_v41 = vsel %vm143_vm1, %v360_v40, -inf }
 0x19c   :  { %369 = vmax.xlane.f32.xlu2 %v368_v41 }
 0x202   :  { %v193_v42 = vpop.f32.mrf.mxu2  ;;  %v220_v48 = vpop.f32.mrf.mxu3 }
 0x203   :  { %v361_v43 = vsel %vm1321_vm2, -100000.0, %v193_v42  ;;  %v362_v50 = vsel %vm1321_vm2, -100000.0, %v220_v48 }
 0x204   :  { %v247_v44 = vpop.f32.mrf.mxu1  ;;  %v371_v45 = vsel %vm143_vm1, %v361_v43, -inf  ;;  %v374_v53 = vsel %vm143_vm1, %v362_v50, -inf }
 0x205   :  { %v363_v46 = vsel %vm1321_vm2, -100000.0, %v247_v44  ;;  %372 = vmax.xlane.f32.xlu2 %v371_v45 }
 0x206   :  { %v377_v47 = vsel %vm143_vm1, %v363_v46, -inf }
 0x207   :  { %378 = vmax.xlane.f32.xlu0 %v377_v47 }
 0x20a   :  { %v274_v49 = vpop.f32.mrf.mxu2 }
 0x20b   :  { %v1338_v51 = vsel %vm1321_vm2, -100000.0, %v274_v49 }
 0x20c   :  { %v380_v52 = vsel %vm143_vm1, %v1338_v51, -inf  ;;  %v328_v63 = vpop.f32.mrf.mxu1 }
 0x20d   :  { %381 = vmax.xlane.f32.xlu1 %v380_v52  ;;  %v366_v1 = vsel %vm1321_vm2, -100000.0, %v328_v63 }
 0x20e   :  { %v386_v3 = vsel %vm143_vm1, %v366_v1, -inf }
 0x20f   :  { %v370_v54 = vpop.xlane.xlu2 %369  ;;  %375 = vmax.xlane.f32.xlu0 %v374_v53 }
 0x210   :  { %v392_v55 = vsub.f32 %v360_v40, %v370_v54 }
 0x212   :  { %v400_v56 = vmul.f32 1.442695, %v392_v55  ;;  %v301_v57 = vpop.f32.mrf.mxu3 }
 0x213   :  { %v365_v58 = vsel %vm1321_vm2, -100000.0, %v301_v57  ;;  %v355_v59 = vpop.f32.mrf.mxu2 }
 0x214   :  { %1065 = vpow2.f32 %v400_v56  ;;  %v367_v60 = vsel %vm1321_vm2, -100000.0, %v355_v59  ;;  %v383_v61 = vsel %vm143_vm1, %v365_v58, -inf }
 0x215   :  { %384 = vmax.xlane.f32.xlu1 %v383_v61  ;;  %v389_v62 = vsel %vm143_vm1, %v367_v60, -inf }
 0x216   :  { %390 = vmax.xlane.f32.xlu2 %v389_v62 }
 0x21a   :  { %v1349_v0 = vpop.eup %1065 }
 0x21b   :  { %v416_v2 = vsel %vm143_vm1, %v1349_v0, 0.0 }
 0x21c   :  { %417 = vadd.xlane.f32.xlu0 %v416_v2 }
 0x21e   :  { %387 = vmax.xlane.f32.xlu2 %v386_v3 }
 0x230   :  { %1044 = vrot.lane.b32.xlu0 %v1043_v4, %s1208_s12 }
 0x278   :  { %v373_v5 = vpop.xlane.xlu2 %372 }
 0x279   :  { %v393_v6 = vsub.f32 %v361_v43, %v373_v5 }
 0x27a   :  { %v379_v7 = vpop.xlane.xlu0 %378 }
 0x27b   :  { %v402_v9 = vmul.f32 1.442695, %v393_v6  ;;  %v395_v19 = vsub.f32 %v363_v46, %v379_v7 }
 0x27d   :  { %1067 = vpow2.f32 %v402_v9  ;;  %v406_v20 = vmul.f32 1.442695, %v395_v19 }
 0x27f   :  { %1069 = vpow2.f32 %v406_v20 }
 0x280   :  { %v382_v21 = vpop.xlane.xlu1 %381 }
 0x281   :  { %v396_v39 = vsub.f32 %v1338_v51, %v382_v21 }
 0x282   :  { %v376_v22 = vpop.xlane.xlu0 %375 }
 0x283   :  { %v1359_v23 = vpop.eup %1067  ;;  %v394_v24 = vsub.f32 %v362_v50, %v376_v22  ;;  %v408_v44 = vmul.f32 1.442695, %v396_v39 }
 0x284   :  { %v419_v25 = vsel %vm143_vm1, %v1359_v23, 0.0 }
 0x285   :  { %v1363_v8 = vpop.eup %1069  ;;  %v404_v17 = vmul.f32 1.442695, %v394_v24  ;;  %420 = vadd.xlane.f32.xlu0 %v419_v25 }
 0x286   :  { %v425_v26 = vsel %vm143_vm1, %v1363_v8, 0.0 }
 0x287   :  { %1071 = vpow2.f32 %v404_v17  ;;  %426 = vadd.xlane.f32.xlu1 %v425_v26 }
 0x288   :  { %v385_v27 = vpop.xlane.xlu1 %384 }
 0x289   :  { %v397_v28 = vsub.f32 %v365_v58, %v385_v27  ;;  %v391_v29 = vpop.xlane.xlu2 %390 }
 0x28a   :  { %v399_v31 = vsub.f32 %v367_v60, %v391_v29  ;;  %v1048_v60 = vpack.i.bf16 %v1283_v15, %v1267_v10 }
 0x28b   :  { %v410_v30 = vmul.f32 1.442695, %v397_v28 }
 0x28c   :  { %v414_v34 = vmul.f32 1.442695, %v399_v31 }
 0x28d   :  { %v1367_v32 = vpop.eup %1071  ;;  %1073 = vpow2.f32 %v410_v30 }
 0x28e   :  { %v422_v33 = vsel %vm143_vm1, %v1367_v32, 0.0 }
 0x28f   :  { %v418_v35 = vpop.xlane.xlu0 %417  ;;  %423 = vadd.xlane.f32.xlu2 %v422_v33 }
 0x290   :  { %1075 = vrcp.f32 %v418_v35  ;;  %v451_v48 = vand.u32 2147483648, %v418_v35  ;;  %v449_v50 = vand.u32 2147483647, %v418_v35  ;;  %vm445_vm4 = vweird.f32 %v418_v35 }
 0x291   :  { %v388_v36 = vpop.xlane.xlu2 %387  ;;  %1077 = vpow2.f32 %v414_v34 }
 0x292   :  { %v398_v37 = vsub.f32 %v366_v1, %v388_v36  ;;  %v452_v12 = vor.u32 1.1754944e-38, %v451_v48  ;;  %vm450_vm6 = vcmp.eq.f32.partialorder %v449_v50, 8.507059e+37 }
 0x293   :  { %v1371_v38 = vpop.eup %1073 }
 0x294   :  { %v412_v40 = vmul.f32 1.442695, %v398_v37  ;;  %v431_v41 = vsel %vm143_vm1, %v1371_v38, 0.0 }
 0x295   :  { %432 = vadd.xlane.f32.xlu1 %v431_v41 }
 0x296   :  { %v1076_v42 = vpop.eup %1075  ;;  %1079 = vpow2.f32 %v412_v40 }
 0x297   :  { %v441_v43 = vmul.f32 %v1076_v42, %v418_v35  ;;  %v1376_v45 = vpop.eup %1077  ;;  %vm446_vm3 = vweird.f32 %v1076_v42  ;;  %1081 = vpow2.f32 %v408_v44 }
 0x298   :  { %v437_v51 = vsel %vm143_vm1, %v1376_v45, 0.0  ;;  %vm447_vm5 = vmor %vm445_vm4, %vm446_vm3 }
 0x299   :  { %v442_v46 = vsub.f32 1.0, %v441_v43  ;;  %1059 = vrot.lane.b32.xlu0 %v1058_v13, %s1208_s12 }
 0x29b   :  { %v443_v47 = vmul.f32 %v1076_v42, %v442_v46 }
 0x29c   :  { %v1382_v49 = vpop.eup %1079 }
 0x29d   :  { %v444_v52 = vadd.f32 %v1076_v42, %v443_v47  ;;  %438 = vadd.xlane.f32.xlu1 %v437_v51  ;;  %v434_v53 = vsel %vm143_vm1, %v1382_v49, 0.0  ;;  %v1388_v54 = vpop.eup %1081 }
 0x29e   :  { %435 = vadd.xlane.f32.xlu2 %v434_v53  ;;  %v428_v59 = vsel %vm143_vm1, %v1388_v54, 0.0 }
 0x29f   :  { %v448_v11 = vsel %vm447_vm5, %v1076_v42, %v444_v52 }
 0x2a0   :  { %v453_v13 = vsel %vm450_vm6, %v452_v12, %v448_v11 }
 0x2a1   :  { %v552_v58 = vmul.f32 %v1349_v0, %v453_v13 }
 0x2a2   :  { %v1045_v55 = vpop.permute.xlu0 %1044 }
 0x2a3   :  { %v1047_v56 = vunpack.i.h.bf16 %v1045_v55  ;;  %v1046_v57 = vunpack.i.l.bf16 %v1045_v55 }
 0x2a5   :  { %581 = vmatpush.msra.mxu3 %v1046_v57  ;;  %659 = vmatpush.msrb.mxu2 %v1047_v56 }
 0x2a6   :  { %429 = vadd.xlane.f32.xlu2 %v428_v59  ;;  %1016 = vmatmul.msk.f32.vlgmr.msra.gmra.mxu3 %vm143_vm1, %v552_v58 }
 0x2b6   :  { %1049 = vrot.lane.b32.xlu1 %v1048_v60, %s1208_s12 }
 0x2be   :  { %1054 = vrot.lane.b32.xlu2 %v1053_v18, %s1208_s12 }
 0x2f8   :  { %v1403_v1 = vpop.xlane.xlu0 %420 }
 0x2f9   :  { %v465_v28 = vand.u32 2147483648, %v1403_v1  ;;  %vm459_vm2 = vweird.f32 %v1403_v1  ;;  %v463_v47 = vand.u32 2147483647, %v1403_v1 }
 0x2fa   :  { %v427_v61 = vpop.xlane.xlu1 %426 }
 0x2fb   :  { %1083 = vrcp.f32 %v427_v61  ;;  %v493_v3 = vand.u32 2147483648, %v427_v61  ;;  %v491_v15 = vand.u32 2147483647, %v427_v61  ;;  %vm487_vm8 = vweird.f32 %v427_v61 }
 0x2fc   :  { %v466_v12 = vor.u32 1.1754944e-38, %v465_v28 }
 0x2fd   :  { %v494_v16 = vor.u32 1.1754944e-38, %v493_v3  ;;  %vm492_vm10 = vcmp.eq.f32.partialorder %v491_v15, 8.507059e+37 }
 0x301   :  { %v1084_v62 = vpop.eup %1083 }
 0x302   :  { %v483_v63 = vmul.f32 %v1084_v62, %v427_v61  ;;  %v1401_v0 = vpop.xlane.xlu2 %423  ;;  %vm488_vm7 = vweird.f32 %v1084_v62 }
 0x303   :  { %1085 = vrcp.f32 %v1401_v0  ;;  %vm489_vm9 = vmor %vm487_vm8, %vm488_vm7  ;;  %vm473_vm13 = vweird.f32 %v1401_v0  ;;  %v479_v35 = vand.u32 2147483648, %v1401_v0  ;;  %v477_v39 = vand.u32 2147483647, %v1401_v0 }
 0x304   :  { %v484_v2 = vsub.f32 1.0, %v483_v63  ;;  %1087 = vrcp.f32 %v1403_v1 }
 0x305   :  { %v480_v51 = vor.u32 1.1754944e-38, %v479_v35  ;;  %vm478_vm5 = vcmp.eq.f32.partialorder %v477_v39, 8.507059e+37 }
 0x306   :  { %v485_v10 = vmul.f32 %v1084_v62, %v484_v2 }
 0x308   :  { %v486_v4 = vadd.f32 %v1084_v62, %v485_v10  ;;  %v1407_v14 = vpop.xlane.xlu1 %432 }
 0x309   :  { %v1086_v18 = vpop.eup %1085 }
 0x30a   :  { %v490_v5 = vsel %vm489_vm9, %v1084_v62, %v486_v4  ;;  %v1409_v7 = vpop.eup %1087  ;;  %v469_v19 = vmul.f32 %v1086_v18, %v1401_v0  ;;  %vm474_vm12 = vweird.f32 %v1086_v18 }
 0x30b   :  { %v495_v6 = vsel %vm492_vm10, %v494_v16, %v490_v5  ;;  %v455_v20 = vmul.f32 %v1409_v7, %v1403_v1  ;;  %vm460_vm11 = vweird.f32 %v1409_v7  ;;  %vm1436_vm14 = vmor %vm473_vm13, %vm474_vm12  ;;  %v1452_v52 = vpop.permute.xlu0 %1059  ;;  %vm464_vm10 = vcmp.eq.f32.partialorder %v463_v47, 8.507059e+37 }
 0x30c   :  { %v555_v9 = vmul.f32 %v1363_v8, %v495_v6  ;;  %v470_v22 = vsub.f32 1.0, %v469_v19  ;;  %vm1448_vm3 = vmor %vm459_vm2, %vm460_vm11  ;;  %v1062_v60 = vunpack.i.h.bf16 %v1452_v52  ;;  %v1061_v35 = vunpack.i.l.bf16 %v1452_v52 }
 0x30d   :  { %v456_v25 = vsub.f32 1.0, %v455_v20 }
 0x30e   :  { %1019 = vmatmul.msk.f32.vlgmr.msrb.gmra.mxu2 %vm143_vm1, %v555_v9  ;;  %v471_v17 = vmul.f32 %v1086_v18, %v470_v22 }
 0x30f   :  { %v457_v8 = vmul.f32 %v1409_v7, %v456_v25 }
 0x310   :  { %v439_v21 = vpop.xlane.xlu1 %438  ;;  %v472_v31 = vadd.f32 %v1086_v18, %v471_v17 }
 0x311   :  { %1089 = vrcp.f32 %v439_v21  ;;  %v1416_v24 = vpop.xlane.xlu2 %435  ;;  %v458_v37 = vadd.f32 %v1409_v7, %v457_v8  ;;  %v549_v40 = vand.u32 2147483648, %v439_v21  ;;  %v547_v46 = vand.u32 2147483647, %v439_v21 }
 0x312   :  { %1091 = vrcp.f32 %v1416_v24  ;;  %v476_v48 = vsel %vm1436_vm14, %v1086_v18, %v472_v31  ;;  %vm543_vm4 = vweird.f32 %v439_v21  ;;  %vm529_vm9 = vweird.f32 %v1416_v24 }
 0x313   :  { %1093 = vrcp.f32 %v1407_v14  ;;  %v550_v13 = vor.u32 1.1754944e-38, %v549_v40  ;;  %v462_v55 = vsel %vm1448_vm3, %v1409_v7, %v458_v37  ;;  %v481_v57 = vsel %vm478_vm5, %v480_v51, %v476_v48 }
 0x314   :  { %vm548_vm7 = vcmp.eq.f32.partialorder %v547_v46, 8.507059e+37  ;;  %v535_v10 = vand.u32 2147483648, %v1416_v24  ;;  %v554_v4 = vmul.f32 %v1367_v32, %v481_v57  ;;  %v533_v18 = vand.u32 2147483647, %v1416_v24  ;;  %v1064_v57 = vld [vmem:[%s1536_s4] ss:$0 sm:$0xff] }
 0x315   :  { %v521_v32 = vand.u32 2147483648, %v1407_v14  ;;  %v467_v19 = vsel %vm464_vm10, %v466_v12, %v462_v55  ;;  %s1209_s4 = smov [#allocation8]  }
 0x316   :  { %v536_v20 = vor.u32 1.1754944e-38, %v535_v10  ;;  %s982_s15 = sshll.u32 %s1209_s4, 4  ;;  %s983_s15 = int_to_ptr.vmem [resolvable:$true] %s982_s15 }
 0x317   :  { %v1090_v26 = vpop.eup %1089 }
 0x318   :  { %v1421_v27 = vpop.eup %1091  ;;  %v539_v29 = vmul.f32 %v1090_v26, %v439_v21  ;;  %vm544_vm15 = vweird.f32 %v1090_v26 }
 0x319   :  { %v1424_v30 = vpop.eup %1093  ;;  %v525_v33 = vmul.f32 %v1421_v27, %v1416_v24  ;;  %v1429_v34 = vpop.xlane.xlu2 %429  ;;  %vm545_vm6 = vmor %vm543_vm4, %vm544_vm15  ;;  %vm530_vm8 = vweird.f32 %v1421_v27  ;;  %vm534_vm15 = vcmp.eq.f32.partialorder %v533_v18, 8.507059e+37  ;;  %vm515_vm4 = vweird.f32 %v1407_v14 }
 0x31a   :  { %v540_v36 = vsub.f32 1.0, %v539_v29  ;;  %1095 = vrcp.f32 %v1429_v34  ;;  %v511_v43 = vmul.f32 %v1424_v30, %v1407_v14  ;;  %v505_v5 = vand.u32 2147483647, %v1429_v34  ;;  %vm1472_vm11 = vmor %vm529_vm9, %vm530_vm8 }
 0x31b   :  { %v526_v41 = vsub.f32 1.0, %v525_v33  ;;  %v507_v6 = vand.u32 2147483648, %v1429_v34  ;;  %vm516_vm13 = vweird.f32 %v1424_v30  ;;  %vm501_vm14 = vweird.f32 %v1429_v34 }
 0x31c   :  { %v541_v44 = vmul.f32 %v1090_v26, %v540_v36  ;;  %v512_v58 = vsub.f32 1.0, %v511_v43  ;;  %vm506_vm3 = vcmp.eq.f32.partialorder %v505_v5, 8.507059e+37  ;;  %v519_v29 = vand.u32 2147483647, %v1407_v14  ;;  %vm1490_vm5 = vmor %vm515_vm4, %vm516_vm13 }
 0x31d   :  { %v527_v11 = vmul.f32 %v1421_v27, %v526_v41  ;;  %v508_v24 = vor.u32 1.1754944e-38, %v507_v6  ;;  %v553_v33 = vmul.f32 %v1359_v23, %v467_v19  ;;  %v522_v14 = vor.u32 1.1754944e-38, %v521_v32  ;;  %v769_v41 = vld [vmem:[#allocation7 + $0x8] sm:$0xff] }
 0x31e   :  { %v542_v53 = vadd.f32 %v1090_v26, %v541_v44  ;;  %v513_v16 = vmul.f32 %v1424_v30, %v512_v58 }
 0x31f   :  { %v528_v0 = vadd.f32 %v1421_v27, %v527_v11 }
 0x320   :  { %v1096_v56 = vpop.eup %1095  ;;  %v546_v59 = vsel %vm545_vm6, %v1090_v26, %v542_v53  ;;  %v514_v22 = vadd.f32 %v1424_v30, %v513_v16  ;;  %vm520_vm6 = vcmp.eq.f32.partialorder %v519_v29, 8.507059e+37 }
 0x321   :  { %v551_v61 = vsel %vm548_vm7, %v550_v13, %v546_v59  ;;  %v497_v62 = vmul.f32 %v1096_v56, %v1429_v34  ;;  %v1055_v63 = vpop.permute.xlu2 %1054  ;;  %vm502_vm12 = vweird.f32 %v1096_v56  ;;  %v532_v9 = vsel %vm1472_vm11, %v1421_v27, %v528_v0  ;;  %v768_v27 = vld [vmem:[#allocation7] sm:$0xff] }
 0x322   :  { %v1057_v1 = vunpack.i.h.bf16 %v1055_v63  ;;  %v1056_v2 = vunpack.i.l.bf16 %v1055_v63  ;;  %v559_v3 = vmul.f32 %v1376_v45, %v551_v61  ;;  %vm503_vm2 = vmor %vm501_vm14, %vm502_vm12  ;;  %v537_v17 = vsel %vm534_vm15, %v536_v20, %v532_v9 }
 0x323   :  { %v498_v15 = vsub.f32 1.0, %v497_v62  ;;  %v518_v37 = vsel %vm1490_vm5, %v1424_v30, %v514_v22  ;;  %v558_v23 = vmul.f32 %v1382_v49, %v537_v17  ;;  %v771_v30 = vld [vmem:[#allocation7 + $0x18] sm:$0xff]  ;;  %v770_v49 = vld [vmem:[#allocation7 + $0x10] sm:$0xff] }
 0x324   :  { %633 = vmatpush.msrb.mxu1 %v1057_v1  ;;  %763 = vmatpush.msra.mxu2 %v1056_v2  ;;  %v523_v39 = vsel %vm520_vm6, %v522_v14, %v518_v37 }
 0x325   :  { %v499_v7 = vmul.f32 %v1096_v56, %v498_v15  ;;  %1018 = vmatmul.msk.f32.vlgmr.msrb.gmra.mxu1 %vm143_vm1, %v554_v4  ;;  %1023 = vmatmul.msk.f32.vlgmr.msra.gmra.mxu2 %vm143_vm1, %v559_v3 }
 0x326   :  { %737 = vmatpush.msra.mxu1 %v1062_v60  ;;  %859 = vmatpush.msrb.mxu2 %v771_v30 }
 0x327   :  { %v500_v21 = vadd.f32 %v1096_v56, %v499_v7 }
 0x328   :  { %v1050_v25 = vpop.permute.xlu1 %1049  ;;  %951 = vmatpush.msra.mxu2 %v771_v30  ;;  %836 = vmatpush.msrb.mxu1 %v770_v49 }
 0x329   :  { %v504_v26 = vsel %vm503_vm2, %v1096_v56, %v500_v21  ;;  %v1052_v8 = vunpack.i.h.bf16 %v1050_v25  ;;  %v1051_v28 = vunpack.i.l.bf16 %v1050_v25  ;;  %v583_v40 = vpop.f32.mrf.mxu3 }
 0x32a   :  { %v509_v31 = vsel %vm506_vm3, %v508_v24, %v504_v26 }
 0x32b   :  { %607 = vmatpush.msrb.mxu0 %v1052_v8  ;;  %685 = vmatpush.msrb.mxu3 %v1051_v28  ;;  %v556_v36 = vmul.f32 %v1388_v54, %v509_v31  ;;  %v557_v54 = vmul.f32 %v1371_v38, %v523_v39 }
 0x32c   :  { %1017 = vmatmul.msk.f32.vlgmr.msrb.gmra.mxu0 %vm143_vm1, %v553_v33 }
 0x32d   :  { %790 = vmatpush.msra.mxu3 %v768_v27  ;;  %711 = vmatpush.msra.mxu0 %v1061_v35 }
 0x32e   :  { %1020 = vmatmul.msk.f32.vlgmr.msrb.gmra.mxu3 %vm143_vm1, %v556_v36  ;;  %1022 = vmatmul.msk.f32.vlgmr.msra.gmra.mxu1 %vm143_vm1, %v558_v23 }
 0x32f   :  { %882 = vmatpush.msrb.mxu3 %v768_v27  ;;  %928 = vmatpush.msra.mxu1 %v770_v49 }
 0x330   :  { %813 = vmatpush.msrb.mxu0 %v769_v41 }
 0x334   :  { %1021 = vmatmul.msk.f32.vlgmr.msra.gmra.mxu0 %vm143_vm1, %v557_v54 }
 0x335   :  { %905 = vmatpush.msra.mxu0 %v769_v41 }
 0x336   :  { %1024 = vmatmul.msk.f32.vlgmr.msra.gmra.mxu3 %vm143_vm1, %v583_v40 }
 0x391   :  { %v661_v42 = vpop.f32.mrf.mxu2 }
 0x392   :  { %1027 = vmatmul.msk.f32.vlgmr.msrb.gmra.mxu2 %vm143_vm1, %v661_v42 }
 0x3a2   :  { %v635_v43 = vpop.f32.mrf.mxu1 }
 0x3a3   :  { %1026 = vmatmul.msk.f32.vlgmr.msrb.gmra.mxu1 %vm143_vm1, %v635_v43 }
 0x3a8   :  { %v765_v38 = vpop.f32.mrf.mxu2 }
 0x3a9   :  { %1031 = vmatmul.msk.f32.vlgmr.msra.gmra.mxu2 %vm143_vm1, %v765_v38  ;;  %v609_v44 = vpop.f32.mrf.mxu0 }
 0x3aa   :  { %1025 = vmatmul.msk.f32.vlgmr.msrb.gmra.mxu0 %vm143_vm1, %v609_v44 }
 0x3ab   :  { %v739_v46 = vpop.f32.mrf.mxu1 }
 0x3ac   :  { %1030 = vmatmul.msk.f32.vlgmr.msra.gmra.mxu1 %vm143_vm1, %v739_v46 }
 0x3b1   :  { %v687_v47 = vpop.f32.mrf.mxu3  ;;  %v713_v48 = vpop.f32.mrf.mxu0 }
 0x3b2   :  { %1028 = vmatmul.msk.f32.vlgmr.msrb.gmra.mxu3 %vm143_vm1, %v687_v47  ;;  %1029 = vmatmul.msk.f32.vlgmr.msra.gmra.mxu0 %vm143_vm1, %v713_v48 }
 0x3b9   :  { %v792_v50 = vpop.f32.mrf.mxu3 }
 0x3ba   :  { %v956_v53 = vsel %vm83_vm0, %v792_v50, 0.0 }
 0x415   :  { %v861_v12 = vpop.f32.mrf.mxu2 }
 0x416   :  { %v961_v58 = vsel %vm83_vm0, %v861_v12, 0.0 }
 0x420   :  { %v838_v51 = vpop.f32.mrf.mxu1 }
 0x421   :  { %v959_v55 = vsel %vm83_vm0, %v838_v51, 0.0 }
 0x427   :  { %v815_v52 = vpop.f32.mrf.mxu0 }
 0x428   :  { %v957_v11 = vsel %vm83_vm0, %v815_v52, 0.0 }
 0x429   :  { %v958_v13 = vadd.f32 %v957_v11, %v956_v53  ;;  %v930_v62 = vpop.f32.mrf.mxu1 }
 0x42a   :  { %v966_v10 = vsel %vm83_vm0, %v930_v62, 0.0 }
 0x42b   :  { %v960_v56 = vadd.f32 %v959_v55, %v958_v13 }
 0x42c   :  { %v953_v2 = vpop.f32.mrf.mxu2 }
 0x42d   :  { %v962_v59 = vadd.f32 %v961_v58, %v960_v56  ;;  %v968_v4 = vsel %vm83_vm0, %v953_v2, 0.0 }
 0x42f   :  { %v974_v60 = vadd.f32 %v1064_v57, %v962_v59  ;;  %v907_v61 = vpop.f32.mrf.mxu0 }
 0x430   :  { %v964_v0 = vsel %vm83_vm0, %v907_v61, 0.0 }
 0x431   :  { %976 = vst.msk [vmem:[#allocation8] sm:$0xff] %vm83_vm0, %v974_v60 }
 0x435   :  { %v884_v63 = vpop.f32.mrf.mxu3 }
 0x436   :  { %v963_v1 = vsel %vm83_vm0, %v884_v63, 0.0 }
 0x437   :  { %v965_v3 = vadd.f32 %v964_v0, %v963_v1 }
 0x439   :  { %v967_v15 = vadd.f32 %v966_v10, %v965_v3 }
 0x43b   :  { %v969_v16 = vadd.f32 %v968_v4, %v967_v15 }
 0x43d   :  { %v975_v18 = vadd.f32 %v1064_v57, %v969_v16 }
 0x43f   :  { %977 = vst.msk [vmem:[#allocation8 + $0x8] sm:$0xff] %vm83_vm0, %v975_v18 }
 0x440   :  { %990 = dma.vmem_to_hbm [thread:$0]  %s983_s15, 256, %s985_s18, [#allocation4], %s1200_s26, %s1200_s26, %s1201_s27  }
 0x441   :  { %1197 = dma.done.wait [#allocation4], 256  }
 0x442   :  { %1198 = vsyncadd [#allocation4], 4294967040 }
 0x443   :  { %995 = vsyncpa [#allocation3], 1 }
 0x444   :  { %996 = vsyncpa [#allocation6], 1 }
 0x445   :  { %997 = vsyncpa [#allocation4], 1 }

</bundles_post_ra>
